<compile_context>
chip_gen: v5e
topology: v5e:2x2
jax: 0.10.0
libtpu: 0.0.40
codegen_flags: <defaults>
</compile_context>

<pallas_src>
import functools

import jax
import jax.numpy as jnp
from jax.experimental import pallas as pl
from jax.experimental.pallas import tpu as pltpu


def _round_up(a, m):
    return ((a + m - 1) // m) * m


def _cdiv(a, b):
    return -(-a // b)


def _vmem_capacity_bytes():
    """Physical VMEM per core; conservative fallback if the query is unavailable."""
    try:
        info = pltpu.get_tpu_info()
        cap = getattr(info, "vmem_capacity_bytes", None)
        if cap:
            return int(cap)
    except Exception:
        pass
    return 64 << 20  # v7x-sized conservative default


def _choose_row_tiling(B, max_block_rows=4096, min_rows_for_two_tiles=512):
    """Even row tiles: TB multiple of 8, balanced tile count, >=2 tiles when B is big
    (so dimension_semantics=('parallel',) can shard across both v7x TensorCores)."""
    B8 = _round_up(B, 8)
    num_tiles = _cdiv(B8, max_block_rows)
    if B8 >= min_rows_for_two_tiles:
        num_tiles = max(num_tiles, 2)
    if num_tiles > 1 and num_tiles % 2:
        num_tiles += 1                       # even tile count for 2-TC balance
    num_tiles = max(1, min(num_tiles, B8 // 8))
    TB = _round_up(_cdiv(B8, num_tiles), 8)
    num_tiles = _cdiv(B8, TB)
    Bp = TB * num_tiles
    return TB, Bp, num_tiles


# ----------------------------------------------------------------------------
# Pallas kernel: representation MLP + 2-layer head, concat folded as
#   concat([state, ids]) @ W1 + b1 == state @ W1[:rep] + (ids @ W1[rep:] + b1)
# Weights are bf16 / MXU path; accumulation and elementwise math stay f32.
# ----------------------------------------------------------------------------
def _policy_head_kernel(x_ref, ids_ref, wr_ref, br_ref, w1x_ref, w1i_ref, b1_ref,
                        w2_ref, b2_ref, out_ref, *, final_act):
    bf16 = jnp.bfloat16

    # representation: state = ReLU(x @ Wr + br)
    state = jnp.dot(x_ref[...].astype(bf16), wr_ref[...],
                    preferred_element_type=jnp.float32) + br_ref[...]
    state = jnp.maximum(state, 0.0)

    # per-row bias from the agent-id half of the concat (tiny K = n_agents matmul)
    row_b1 = jnp.dot(ids_ref[...].astype(bf16), w1i_ref[...],
                     preferred_element_type=jnp.float32) + b1_ref[...]

    h = jnp.dot(state.astype(bf16), w1x_ref[...],
                preferred_element_type=jnp.float32) + row_b1
    h = jnp.maximum(h, 0.0)

    y = jnp.dot(h.astype(bf16), w2_ref[...],
                preferred_element_type=jnp.float32) + b2_ref[...]
    if final_act == "tanh":
        y = jnp.tanh(y)
    out_ref[...] = y.astype(out_ref.dtype)


# ----------------------------------------------------------------------------
# Wrapper: row-tiled pallas_call, VMEM-resident weights, lane-dense output
# ----------------------------------------------------------------------------
def _run_policy_head(x, ids, q, final_act, max_block_rows=4096):
    """x: (B, d_in) f32, ids: (B, n_agents) f32. Returns (B, d_pad) f32 lane-padded."""
    B, d_in = x.shape
    n_agents = ids.shape[1]
    rep_dim = q["Wr"].shape[1]
    hidden = q["W1x"].shape[1]
    d_pad = q["W2p"].shape[1]          # multiple of 128 (lane-dense output)

    TB, Bp, num_tiles = _choose_row_tiling(B, max_block_rows)
    if Bp != B:
        x = jnp.pad(x, ((0, Bp - B), (0, 0)))
        ids = jnp.pad(ids, ((0, Bp - B), (0, 0)))
    grid = (num_tiles,)

    def row_spec(d):
        return pl.BlockSpec((TB, d), lambda i: (i, 0))

    def full_spec(arr):
        return pl.BlockSpec(arr.shape, lambda i: (0, 0))

    weights = (q["Wr"], q["br"], q["W1x"], q["W1i"], q["b1"], q["W2p"], q["b2p"])
    w_bytes = sum(int(a.size) * a.dtype.itemsize for a in weights)

    flops = 2 * Bp * (d_in * rep_dim + n_agents * hidden
                      + rep_dim * hidden + hidden * d_pad)
    transcendentals = Bp * d_pad if final_act == "tanh" else 0
    bytes_accessed = (4 * Bp * (d_in + n_agents + d_pad)) + w_bytes

    # VMEM budget: double-buffered row streams + (double-buffered) resident weights
    # + intermediate headroom, capped at a fraction of this generation's VMEM.
    stream_bytes = 2 * 4 * TB * (d_in + n_agents + d_pad)
    temp_bytes = 4 * TB * (rep_dim + hidden + d_pad)
    needed = stream_bytes + 2 * w_bytes + temp_bytes + (4 << 20)
    cap = _vmem_capacity_bytes()
    vmem_limit = max(min(needed, (cap * 3) // 4), 16 << 20)

    out = pl.pallas_call(
        functools.partial(_policy_head_kernel, final_act=final_act),
        out_shape=jax.ShapeDtypeStruct((Bp, d_pad), jnp.float32),
        grid=grid,
        in_specs=[row_spec(d_in), row_spec(n_agents),
                  full_spec(q["Wr"]), full_spec(q["br"]),
                  full_spec(q["W1x"]), full_spec(q["W1i"]), full_spec(q["b1"]),
                  full_spec(q["W2p"]), full_spec(q["b2p"])],
        out_specs=row_spec(d_pad),
        compiler_params=pltpu.CompilerParams(
            dimension_semantics=("parallel",),
            vmem_limit_bytes=int(vmem_limit)),
        cost_estimate=pl.CostEstimate(flops=flops,
                                      transcendentals=transcendentals,
                                      bytes_accessed=bytes_accessed),
    )(x, ids, q["Wr"], q["br"], q["W1x"], q["W1i"], q["b1"], q["W2p"], q["b2p"])
    return out[:B]


# ----------------------------------------------------------------------------
# MAAC_Policy wrapper (no-RNN path, parameter sharing, mixer=None)
# ----------------------------------------------------------------------------
class MAACPolicyPallas:
    def __init__(self, params):
        self.p = params
        self._prep = {}
        bf16 = jnp.bfloat16
        for head in ("actor", "critic"):
            Wr = params[f"{head}_rep_W"]
            rep_dim = Wr.shape[1]
            W1 = params[f"{head}_W1"]
            W2 = params[f"{head}_W2"]
            b2 = params[f"{head}_b2"]
            d_out = W2.shape[1]
            d_pad = _round_up(max(d_out, 1), 128)      # lane-dense output width
            self._prep[head] = {
                "Wr": Wr.astype(bf16),
                "br": params[f"{head}_rep_b"].reshape(1, -1).astype(jnp.float32),
                "W1x": W1[:rep_dim].astype(bf16),       # (rep_dim, hidden)
                "W1i": W1[rep_dim:].astype(bf16),       # (n_agents, hidden)
                "b1": params[f"{head}_b1"].reshape(1, -1).astype(jnp.float32),
                "W2p": jnp.pad(W2, ((0, 0), (0, d_pad - d_out))).astype(bf16),
                "b2p": jnp.pad(b2, (0, d_pad - d_out)).reshape(1, -1).astype(jnp.float32),
                "d_out": d_out,
            }
        # TODO(synk): actor + critic heads could share one pallas_call (shared x
        # stream, concatenated per-head weights) when both run in the same step.

    def _head(self, head, x2, ids2):
        q = self._prep[head]
        y = _run_policy_head(x2.astype(jnp.float32), ids2.astype(jnp.float32), q,
                             final_act="tanh" if head == "actor" else "none")
        return y[:, :q["d_out"]]

    def forward(self, observation, agent_ids):
        """observation: (B, obs_dim), agent_ids: (B, n_agents) one-hot."""
        mu = self._head("actor", observation, agent_ids)
        std = jnp.broadcast_to(jnp.exp(self.p["actor_log_std"])[None, :], mu.shape)
        rnn_hidden = None   # use_rnn = False
        return rnn_hidden, (mu, std)

    def get_values(self, critic_in, agent_ids):
        """critic_in: (batch, n_agents, d_in), agent_ids: (batch, n_agents, n_agents)."""
        batch, n_agents, d_in = critic_in.shape
        v = self._head("critic",
                       critic_in.reshape(-1, d_in),
                       agent_ids.reshape(-1, n_agents))
        rnn_hidden = None
        return rnn_hidden, v.reshape(batch, n_agents, 1)

    def value_tot(self, values_n, global_state=None):
        # mixer=None path of the reference module
        return values_n


# ----------------------------------------------------------------------------
# Deterministic parameter initialization (synthetic weights)
# ----------------------------------------------------------------------------
def init_params(key, obs_dim, rep_dim, hidden, action_dim, n_agents):
    ks = jax.random.split(key, 12)
    s = 0.1

    def w(k, shape):
        return (s * jax.random.normal(k, shape)).astype(jnp.float32)

    return {
        "actor_rep_W": w(ks[0], (obs_dim, rep_dim)),
        "actor_rep_b": w(ks[1], (rep_dim,)),
        "actor_W1": w(ks[2], (rep_dim + n_agents, hidden)),
        "actor_b1": w(ks[3], (hidden,)),
        "actor_W2": w(ks[4], (hidden, action_dim)),
        "actor_b2": w(ks[5], (action_dim,)),
        "actor_log_std": jnp.zeros((action_dim,), jnp.float32),
        "critic_rep_W": w(ks[6], (obs_dim, rep_dim)),
        "critic_rep_b": w(ks[7], (rep_dim,)),
        "critic_W1": w(ks[8], (rep_dim + n_agents, hidden)),
        "critic_b1": w(ks[9], (hidden,)),
        "critic_W2": w(ks[10], (hidden, 1)),
        "critic_b2": w(ks[11], (1,)),
    }


# ----------------------------------------------------------------------------
# Pure-JAX reference (mirrors the kernel's bf16 weight / f32 accumulation path)
# ----------------------------------------------------------------------------
def _ref_head(x, ids, Wr, br, W1, b1, W2, b2, final_act):
    bf = jnp.bfloat16
    state = jnp.maximum(
        jnp.dot(x.astype(bf), Wr.astype(bf), preferred_element_type=jnp.float32) + br, 0.0)
    ai = jnp.concatenate([state, ids], axis=-1)
    h = jnp.maximum(
        jnp.dot(ai.astype(bf), W1.astype(bf), preferred_element_type=jnp.float32) + b1, 0.0)
    y = jnp.dot(h.astype(bf), W2.astype(bf), preferred_element_type=jnp.float32) + b2
    return jnp.tanh(y) if final_act == "tanh" else y


if __name__ == "__main__":
    batch, n_agents = 2, 4
    obs_dim, rep_dim, hidden, action_dim = 16, 32, 32, 4
    B = batch * n_agents          # parameter-sharing: rows = batch * n_agents

    key = jax.random.PRNGKey(0)
    kp, ko, kc, kb = jax.random.split(key, 4)

    params = init_params(kp, obs_dim, rep_dim, hidden, action_dim, n_agents)
    policy = MAACPolicyPallas(params)

    observation = jax.random.normal(ko, (B, obs_dim), dtype=jnp.float32)
    agent_ids = jnp.tile(jnp.eye(n_agents, dtype=jnp.float32), (batch, 1))  # (B, n_agents)

    # --- forward (actor head) ---
    rnn_hidden, (mu, std) = policy.forward(observation, agent_ids)
    mu = jax.block_until_ready(mu)
    std = jax.block_until_ready(std)

    mu_ref = _ref_head(observation, agent_ids,
                       params["actor_rep_W"], params["actor_rep_b"],
                       params["actor_W1"], params["actor_b1"],
                       params["actor_W2"], params["actor_b2"], "tanh")
    assert mu.shape == (B, action_dim) and std.shape == (B, action_dim)
    assert jnp.allclose(mu, mu_ref, atol=1e-3, rtol=1e-3)
    assert jnp.allclose(std, jnp.exp(params["actor_log_std"])[None, :], atol=1e-6)

    # --- get_values (critic head) ---
    critic_in = jax.random.normal(kc, (batch, n_agents, obs_dim), dtype=jnp.float32)
    ids3 = jnp.broadcast_to(jnp.eye(n_agents, dtype=jnp.float32)[None],
                            (batch, n_agents, n_agents))
    _, v = policy.get_values(critic_in, ids3)
    v = jax.block_until_ready(v)

    v_ref = _ref_head(critic_in.reshape(-1, obs_dim), ids3.reshape(-1, n_agents),
                      params["critic_rep_W"], params["critic_rep_b"],
                      params["critic_W1"], params["critic_b1"],
                      params["critic_W2"], params["critic_b2"], "none")
    assert v.shape == (batch, n_agents, 1)
    assert jnp.allclose(v.reshape(-1, 1), v_ref, atol=1e-3, rtol=1e-3)

    # --- larger batch: exercises multi-tile grid (2 balanced tiles, no row padding) ---
    big_batch = 160                         # B = 640 -> 2 tiles of 320 rows each
    Bb = big_batch * n_agents
    obs_big = jax.random.normal(kb, (Bb, obs_dim), dtype=jnp.float32)
    ids_big = jnp.tile(jnp.eye(n_agents, dtype=jnp.float32), (big_batch, 1))
    _, (mu_big, _) = policy.forward(obs_big, ids_big)
    mu_big = jax.block_until_ready(mu_big)
    mu_big_ref = _ref_head(obs_big, ids_big,
                           params["actor_rep_W"], params["actor_rep_b"],
                           params["actor_W1"], params["actor_b1"],
                           params["actor_W2"], params["actor_b2"], "tanh")
    assert mu_big.shape == (Bb, action_dim)
    assert jnp.allclose(mu_big, mu_big_ref, atol=1e-3, rtol=1e-3)

    # TODO(synk): RNN (GRU/LSTM) representation branch (use_rnn=True) and VDN mixer
    # path are not implemented (mixer=None, use_rnn=False semantics only).
    print("KERNEL_OK")
</pallas_src>

<mosaic_0001>
module attributes {stable_mosaic.version = 11 : i64} {
  func.func @_policy_head_kernel(%arg0: i32, %arg1: memref<8x16xf32, #tpu.memory_space<vmem>>, %arg2: memref<8x4xf32, #tpu.memory_space<vmem>>, %arg3: memref<16x32xbf16, #tpu.memory_space<vmem>>, %arg4: memref<1x32xf32, #tpu.memory_space<vmem>>, %arg5: memref<32x32xbf16, #tpu.memory_space<vmem>>, %arg6: memref<4x32xbf16, #tpu.memory_space<vmem>>, %arg7: memref<1x32xf32, #tpu.memory_space<vmem>>, %arg8: memref<32x128xbf16, #tpu.memory_space<vmem>>, %arg9: memref<1x128xf32, #tpu.memory_space<vmem>>, %arg10: memref<8x128xf32, #tpu.memory_space<vmem>>) attributes {dimension_semantics = [#tpu.dimension_semantics<parallel>], iteration_bounds = array<i64: 1>, scalar_prefetch = 0 : i64, scratch_operands = 0 : i64, tpu.core_type = #tpu.core_type<tc>, window_params = [{transform_indices = @transform_0, window_bounds = array<i64: 8, 16>}, {transform_indices = @transform_1, window_bounds = array<i64: 8, 4>}, {pipeline_mode = #tpu.pipeline_mode<synchronous>, transform_indices = @transform_2, window_bounds = array<i64: 16, 32>}, {pipeline_mode = #tpu.pipeline_mode<synchronous>, transform_indices = @transform_3, window_bounds = array<i64: 1, 32>}, {pipeline_mode = #tpu.pipeline_mode<synchronous>, transform_indices = @transform_4, window_bounds = array<i64: 32, 32>}, {pipeline_mode = #tpu.pipeline_mode<synchronous>, transform_indices = @transform_5, window_bounds = array<i64: 4, 32>}, {pipeline_mode = #tpu.pipeline_mode<synchronous>, transform_indices = @transform_6, window_bounds = array<i64: 1, 32>}, {pipeline_mode = #tpu.pipeline_mode<synchronous>, transform_indices = @transform_7, window_bounds = array<i64: 32, 128>}, {pipeline_mode = #tpu.pipeline_mode<synchronous>, transform_indices = @transform_8, window_bounds = array<i64: 1, 128>}, {transform_indices = @transform_9, window_bounds = array<i64: 8, 128>}]} {
    %c0 = arith.constant 0 : index
    %c0_0 = arith.constant 0 : index
    %0 = vector.load %arg1[%c0, %c0_0] : memref<8x16xf32, #tpu.memory_space<vmem>>, vector<8x16xf32>
    %1 = arith.truncf %0 : vector<8x16xf32> to vector<8x16xbf16>
    %c0_1 = arith.constant 0 : index
    %c0_2 = arith.constant 0 : index
    %2 = vector.load %arg3[%c0_1, %c0_2] : memref<16x32xbf16, #tpu.memory_space<vmem>>, vector<16x32xbf16>
    %cst = arith.constant dense<0.000000e+00> : vector<8x32xf32>
    %3 = tpu.matmul %1, %2, %cst {dimension_numbers = #tpu.dot_dimension_numbers<[1], [0], [0], [1], [0, 0, 1, 1], [], []>} : vector<8x16xbf16>, vector<16x32xbf16>, vector<8x32xf32> -> vector<8x32xf32>
    %c0_3 = arith.constant 0 : index
    %c0_4 = arith.constant 0 : index
    %4 = vector.load %arg4[%c0_3, %c0_4] : memref<1x32xf32, #tpu.memory_space<vmem>>, vector<1x32xf32>
    %5 = vector.broadcast %4 : vector<1x32xf32> to vector<8x32xf32>
    %6 = arith.addf %3, %5 : vector<8x32xf32>
    %cst_5 = arith.constant 0.000000e+00 : f32
    %7 = vector.broadcast %cst_5 : f32 to vector<8x32xf32>
    %8 = arith.maximumf %6, %7 : vector<8x32xf32>
    %c0_6 = arith.constant 0 : index
    %c0_7 = arith.constant 0 : index
    %9 = vector.load %arg2[%c0_6, %c0_7] : memref<8x4xf32, #tpu.memory_space<vmem>>, vector<8x4xf32>
    %10 = arith.truncf %9 : vector<8x4xf32> to vector<8x4xbf16>
    %c0_8 = arith.constant 0 : index
    %c0_9 = arith.constant 0 : index
    %11 = vector.load %arg6[%c0_8, %c0_9] : memref<4x32xbf16, #tpu.memory_space<vmem>>, vector<4x32xbf16>
    %cst_10 = arith.constant dense<0.000000e+00> : vector<8x32xf32>
    %12 = tpu.matmul %10, %11, %cst_10 {dimension_numbers = #tpu.dot_dimension_numbers<[1], [0], [0], [1], [0, 0, 1, 1], [], []>} : vector<8x4xbf16>, vector<4x32xbf16>, vector<8x32xf32> -> vector<8x32xf32>
    %c0_11 = arith.constant 0 : index
    %c0_12 = arith.constant 0 : index
    %13 = vector.load %arg7[%c0_11, %c0_12] : memref<1x32xf32, #tpu.memory_space<vmem>>, vector<1x32xf32>
    %14 = vector.broadcast %13 : vector<1x32xf32> to vector<8x32xf32>
    %15 = arith.addf %12, %14 : vector<8x32xf32>
    %16 = arith.truncf %8 : vector<8x32xf32> to vector<8x32xbf16>
    %c0_13 = arith.constant 0 : index
    %c0_14 = arith.constant 0 : index
    %17 = vector.load %arg5[%c0_13, %c0_14] : memref<32x32xbf16, #tpu.memory_space<vmem>>, vector<32x32xbf16>
    %cst_15 = arith.constant dense<0.000000e+00> : vector<8x32xf32>
    %18 = tpu.matmul %16, %17, %cst_15 {dimension_numbers = #tpu.dot_dimension_numbers<[1], [0], [0], [1], [0, 0, 1, 1], [], []>} : vector<8x32xbf16>, vector<32x32xbf16>, vector<8x32xf32> -> vector<8x32xf32>
    %19 = arith.addf %18, %15 : vector<8x32xf32>
    %cst_16 = arith.constant 0.000000e+00 : f32
    %20 = vector.broadcast %cst_16 : f32 to vector<8x32xf32>
    %21 = arith.maximumf %19, %20 : vector<8x32xf32>
    %22 = arith.truncf %21 : vector<8x32xf32> to vector<8x32xbf16>
    %c0_17 = arith.constant 0 : index
    %c0_18 = arith.constant 0 : index
    %23 = vector.load %arg8[%c0_17, %c0_18] : memref<32x128xbf16, #tpu.memory_space<vmem>>, vector<32x128xbf16>
    %cst_19 = arith.constant dense<0.000000e+00> : vector<8x128xf32>
    %24 = tpu.matmul %22, %23, %cst_19 {dimension_numbers = #tpu.dot_dimension_numbers<[1], [0], [0], [1], [0, 0, 1, 1], [], []>} : vector<8x32xbf16>, vector<32x128xbf16>, vector<8x128xf32> -> vector<8x128xf32>
    %c0_20 = arith.constant 0 : index
    %c0_21 = arith.constant 0 : index
    %25 = vector.load %arg9[%c0_20, %c0_21] : memref<1x128xf32, #tpu.memory_space<vmem>>, vector<1x128xf32>
    %26 = vector.broadcast %25 : vector<1x128xf32> to vector<8x128xf32>
    %27 = arith.addf %24, %26 : vector<8x128xf32>
    %28 = math.tanh %27 : vector<8x128xf32>
    %c0_22 = arith.constant 0 : index
    %c0_23 = arith.constant 0 : index
    %29 = vector.load %arg10[%c0_22, %c0_23] : memref<8x128xf32, #tpu.memory_space<vmem>>, vector<8x128xf32>
    tpu.vector_store %arg10[%c0_22, %c0_23], %28 {strides = array<i32>} : memref<8x128xf32, #tpu.memory_space<vmem>>, vector<8x128xf32>,
    return
  }
  func.func @transform_0(%arg0: i32) -> (i32, i32) {
    %c0_i32 = arith.constant 0 : i32
    %c0_i32_0 = arith.constant 0 : i32
    return %arg0, %c0_i32 : i32, i32
  }
  func.func @transform_1(%arg0: i32) -> (i32, i32) {
    %c0_i32 = arith.constant 0 : i32
    %c0_i32_0 = arith.constant 0 : i32
    return %arg0, %c0_i32 : i32, i32
  }
  func.func @transform_2(%arg0: i32) -> (i32, i32) {
    %c0_i32 = arith.constant 0 : i32
    %c0_i32_0 = arith.constant 0 : i32
    %c0_i32_1 = arith.constant 0 : i32
    return %c0_i32, %c0_i32_0 : i32, i32
  }
  func.func @transform_3(%arg0: i32) -> (i32, i32) {
    %c0_i32 = arith.constant 0 : i32
    %c0_i32_0 = arith.constant 0 : i32
    %c0_i32_1 = arith.constant 0 : i32
    return %c0_i32, %c0_i32_0 : i32, i32
  }
  func.func @transform_4(%arg0: i32) -> (i32, i32) {
    %c0_i32 = arith.constant 0 : i32
    %c0_i32_0 = arith.constant 0 : i32
    %c0_i32_1 = arith.constant 0 : i32
    return %c0_i32, %c0_i32_0 : i32, i32
  }
  func.func @transform_5(%arg0: i32) -> (i32, i32) {
    %c0_i32 = arith.constant 0 : i32
    %c0_i32_0 = arith.constant 0 : i32
    %c0_i32_1 = arith.constant 0 : i32
    return %c0_i32, %c0_i32_0 : i32, i32
  }
  func.func @transform_6(%arg0: i32) -> (i32, i32) {
    %c0_i32 = arith.constant 0 : i32
    %c0_i32_0 = arith.constant 0 : i32
    %c0_i32_1 = arith.constant 0 : i32
    return %c0_i32, %c0_i32_0 : i32, i32
  }
  func.func @transform_7(%arg0: i32) -> (i32, i32) {
    %c0_i32 = arith.constant 0 : i32
    %c0_i32_0 = arith.constant 0 : i32
    %c0_i32_1 = arith.constant 0 : i32
    return %c0_i32, %c0_i32_0 : i32, i32
  }
  func.func @transform_8(%arg0: i32) -> (i32, i32) {
    %c0_i32 = arith.constant 0 : i32
    %c0_i32_0 = arith.constant 0 : i32
    %c0_i32_1 = arith.constant 0 : i32
    return %c0_i32, %c0_i32_0 : i32, i32
  }
  func.func @transform_9(%arg0: i32) -> (i32, i32) {
    %c0_i32 = arith.constant 0 : i32
    %c0_i32_0 = arith.constant 0 : i32
    return %arg0, %c0_i32 : i32, i32
  }
}

</mosaic_0001>

<bundles_post_ra>
// kernel: tpu_custom_call.1
= control target key start
LH: loop header
LB: loop body
LE: loop exit
PB: predicated region body
PF: predicated region fallthrough
CT: control target
= control target key end

     0   :  { %14 = vsyncpa [#allocation3], 0  ;;  %s546_s0 = inlined_call_operand.hbm [shape: f32[8,16], index: 0, kind: input, shape index: {}]   ;;  %s547_s1 = inlined_call_operand.vmem [shape: f32[8,4], index: 1, kind: input, shape index: {}]   ;;  %s548_s2 = inlined_call_operand.hbm [shape: bf16[16,32], index: 2, kind: input, shape index: {}]   ;;  %s549_s3 = inlined_call_operand.hbm [shape: f32[1,32], index: 3, kind: input, shape index: {}]   ;;  %s550_s4 = inlined_call_operand.hbm [shape: bf16[32,32], index: 4, kind: input, shape index: {}]   ;;  %s551_s5 = inlined_call_operand.vmem [shape: bf16[4,32], index: 5, kind: input, shape index: {}]   ;;  %s552_s6 = inlined_call_operand.hbm [shape: f32[1,32], index: 6, kind: input, shape index: {}]   ;;  %s553_s7 = inlined_call_operand.vmem [shape: bf16[32,128], index: 7, kind: input, shape index: {}]   ;;  %s554_s8 = inlined_call_operand.vmem [shape: f32[1,128], index: 8, kind: input, shape index: {}]   ;;  %s555_s9 = inlined_call_operand.hbm [shape: f32[8,128], index: 9, kind: output, shape index: {}]  }
   0x1   :  { %15 = vsyncpa [#allocation6], 0 }
   0x2   :  { %16 = vsyncpa [#allocation9], 0  ;;  %s35_s11 = sshll.u32 %s548_s2, 4  ;;  %s36_s11 = int_to_ptr.hbm [resolvable:$true] %s35_s11 }
   0x3   :  { %17 = vsyncpa [#allocation4], 0  ;;  %s453_s12 = smov [#allocation5]   ;;  %s59_s16 = sshll.u32 %s550_s4, 4  ;;  %s60_s16 = int_to_ptr.hbm [resolvable:$true] %s59_s16 }
   0x4   :  { %s37_s13 = sshll.u32 %s453_s12, 4  ;;  %s454_s17 = smov 64   ;;  %s38_s13 = int_to_ptr.vmem [resolvable:$true] %s37_s13 }
   0x5   :  { %s455_s18 = smov 4   ;;  %s456_s19 = smov [#allocation8]  }
   0x6   :  { %43 = dma.hbm_to_vmem [thread:$0]  %s36_s11, 128, %s38_s13, [#allocation6], %s454_s17, %s454_s17, %s455_s18  }
   0x7   :  { %s61_s20 = sshll.u32 %s456_s19, 4  ;;  %s23_s23 = sshll.u32 %s546_s0, 4  ;;  %s62_s20 = int_to_ptr.vmem [resolvable:$true] %s61_s20  ;;  %s24_s23 = int_to_ptr.hbm [resolvable:$true] %s23_s23 }
   0x8   :  { %67 = dma.hbm_to_vmem [thread:$0]  %s60_s16, 256, %s62_s20, [#allocation9], %s454_s17, %s454_s17, %s455_s18  }
   0x9   :  { %s49_s25 = sshll.u32 %s549_s3, 4  ;;  %s457_s26 = smov [#allocation2]   ;;  %s50_s25 = int_to_ptr.hbm [resolvable:$true] %s49_s25 }
   0xa   :  { %s25_s27 = sshll.u32 %s457_s26, 4  ;;  %s458_s4 = smov [#allocation7]   ;;  %s26_s27 = int_to_ptr.vmem [resolvable:$true] %s25_s27 }
   0xb   :  { %28 = dma.hbm_to_vmem [thread:$0]  %s24_s23, 128, %s26_s27, [#allocation3]  }
   0xc   :  { %s51_s28 = sshll.u32 %s458_s4, 4  ;;  %s75_s10 = sshll.u32 %s552_s6, 4  ;;  %s52_s28 = int_to_ptr.vmem [resolvable:$true] %s51_s28  ;;  %s76_s10 = int_to_ptr.hbm [resolvable:$true] %s75_s10 }
   0xd   :  { %54 = dma.hbm_to_vmem [thread:$0]  %s50_s25, 16, %s52_s28, [#allocation6]  }
   0xe   :  { %s459_s0 = smov [#allocation10]  }
   0xf   :  { %s77_s11 = sshll.u32 %s459_s0, 4  ;;  %s78_s11 = int_to_ptr.vmem [resolvable:$true] %s77_s11 }
  0x10   :  { %80 = dma.hbm_to_vmem [thread:$0]  %s76_s10, 16, %s78_s11, [#allocation9]  }
  0x11   :  { %445 = dma.done.wait [#allocation3], 128  }
  0x12   :  { %446 = vsyncadd [#allocation3], 4294967168 }
  0x13   :  { %447 = dma.done.wait [#allocation6], 144  }
  0x14   :  { %448 = vsyncadd [#allocation6], 4294967152 }
  0x15   :  { %449 = dma.done.wait [#allocation9], 272  }
  0x16   :  { %450 = vsyncadd [#allocation9], 4294967024  ;;  %v283_v0 = vld [vmem:[#allocation5] sm:$0xff]  ;;  %v106_v1 = vld [vmem:[#allocation2] sm:$0xff]  ;;  %vm120_vm0 = vcmask 130048   ;;  %vm149_vm1 = vcmask 1041408  }
  0x17   :  { %v107_v2 = vpack.c.bf16 %v106_v1, %v106_v1  ;;  %131 = vmatpush.bf16.msra.mxu0 %v283_v0  ;;  %v140_v3 = vld [vmem:[%s551_s5] sm:$0x3]  ;;  %vm145_vm2 = vcmask 31744   ;;  %v284_v8 = vld [vmem:[#allocation8] sm:$0xff]  ;;  %v296_v9 = vld [vmem:[#allocation7] ss:$0 sm:$0xff] }
  0x18   :  { %v285_v4 = vld [vmem:[#allocation8 + $0x8] sm:$0xff]  ;;  %v151_v5 = vsel %vm149_vm1, %v140_v3, 0  ;;  %vm183_vm3 = vcmask 261120   ;;  %v287_v17 = vld [vmem:[%s553_s7 + $0x8] sm:$0xff]  ;;  %v297_v19 = vld [vmem:[#allocation10] ss:$0 sm:$0xff] }
  0x19   :  { %160 = vmatpush.bf16.msra.mxu1 %v151_v5  ;;  %193 = vmatpush.bf16.msra.mxu2 %v285_v4  ;;  %v138_v6 = vld [vmem:[%s547_s1] sm:$0xff]  ;;  %s460_s18 = smov [#allocation11]   ;;  %s247_s21 = sshll.u32 %s555_s9, 4  ;;  %s248_s21 = int_to_ptr.hbm [resolvable:$true] %s247_s21 }
  0x1a   :  { %263 = vmatmul.msk.bf16.vlgmr.msra.gmra.mxu0 %vm120_vm0, %v107_v2  ;;  %v139_v7 = vpack.c.bf16 %v138_v6, %v138_v6  ;;  %231 = vmatpush.bf16.msra.mxu3 %v287_v17  ;;  %v286_v18 = vld [vmem:[%s553_s7] sm:$0xff]  ;;  %s245_s19 = sshll.u32 %s460_s18, 4  ;;  %s246_s19 = int_to_ptr.vmem [resolvable:$true] %s245_s19 }
  0x1b   :  { %v298_v26 = vld [vmem:[%s554_s8] ss:$0 sm:$0xff] }
  0x1c   :  { %264 = vmatmul.msk.bf16.vlgmr.msra.gmra.mxu1 %vm145_vm2, %v139_v7 }
  0x1d   :  { %194 = vmatpush.bf16.msra.mxu2 %v284_v8 }
  0x1e   :  { %232 = vmatpush.bf16.msra.mxu3 %v286_v18 }
  0x97   :  { %v133_v10 = vpop.f32.mrf.mxu0 }
  0x98   :  { %v134_v11 = vadd.f32 %v296_v9, %v133_v10 }
  0x99   :  { %v162_v15 = vpop.f32.mrf.mxu1 }
  0x9a   :  { %v137_v12 = vmax.f32 %v134_v11, 0.0  ;;  %v163_v20 = vadd.f32 %v297_v19, %v162_v15 }
  0x9c   :  { %v166_v13 = vpack.c.bf16 %v137_v12, %v137_v12 }
  0x9e   :  { %273 = vmatmul.msk.bf16.vlgmr.msra.gmra.mxu2 %vm183_vm3, %v166_v13 }
  0x9f   :  { %v135_v14 = vpop.f32.mrf.mxu0 }
  0xa1   :  { %v164_v16 = vpop.f32.mrf.mxu1 }
 0x121   :  { %v196_v21 = vpop.f32.mrf.mxu2 }
 0x122   :  { %v197_v22 = vadd.f32 %v196_v21, %v163_v20 }
 0x124   :  { %v200_v23 = vmax.f32 %v197_v22, 0.0 }
 0x126   :  { %v201_v24 = vpack.c.bf16 %v200_v23, %v200_v23 }
 0x128   :  { %282 = vmatmul.msk.bf16.vlgmr.msra.gmra.mxu3 %vm183_vm3, %v201_v24 }
 0x129   :  { %v198_v25 = vpop.f32.mrf.mxu2 }
 0x1ab   :  { %v234_v27 = vpop.f32.mrf.mxu3 }
 0x1ac   :  { %v235_v28 = vadd.f32 %v298_v26, %v234_v27 }
 0x1ae   :  { %299 = vtanh.f32 %v235_v28 }
 0x1b3   :  { %v236_v29 = vpop.f32.mrf.mxu3 }
 0x1b4   :  { %v300_v30 = vpop.eup %299 }
 0x1b5   :  { %239 = vst [vmem:[#allocation11] sm:$0xff] %v300_v30 }
 0x1b6   :  { %250 = dma.vmem_to_hbm [thread:$0]  %s246_s19, 128, %s248_s21, [#allocation4]  }
 0x1b7   :  { %451 = dma.done.wait [#allocation4], 128  }
 0x1b8   :  { %452 = vsyncadd [#allocation4], 4294967168 }
 0x1b9   :  { %255 = vsyncpa [#allocation3], 1 }
 0x1ba   :  { %256 = vsyncpa [#allocation6], 1 }
 0x1bb   :  { %257 = vsyncpa [#allocation9], 1 }
 0x1bc   :  { %258 = vsyncpa [#allocation4], 1 }

</bundles_post_ra>
